<compile_context>
chip_gen: v5e
topology: v5e:2x2
jax: 0.10.0
libtpu: 0.0.40
codegen_flags: <defaults>
</compile_context>

<pallas_src>
import functools

import numpy as np
import jax
import jax.numpy as jnp
from jax import lax
from jax.experimental import pallas as pl
from jax.experimental.pallas import tpu as pltpu

_BN_EPS = 1e-3                      # BatchNorm2d(eps=0.001) in BasicConv2d
_ACT_DTYPE = jnp.bfloat16           # activation / GEMM-operand dtype between layers
_VMEM_LIMIT = 48 * 1024 * 1024      # safe on v7x (64 MiB physical VMEM per TC)
_CONV_VMEM_BUDGET = 36 * 1024 * 1024  # direct-conv kernel falls back above this


def _round_up(x, m):
    return (x + m - 1) // m * m


def _pair(v):
    return (v, v) if isinstance(v, int) else tuple(v)


# ----------------------------------------------------------------------------
# Pallas kernel 1: bf16 GEMM (f32 accumulation) + bias + optional ReLU epilogue
# Used by 1x1 convs (incl. fused branches), stride-2 convs, and as a fallback.
# ----------------------------------------------------------------------------
def _matmul_bias_kernel(a_ref, b_ref, bias_ref, o_ref, *, apply_relu):
    acc = jnp.dot(a_ref[...], b_ref[...], preferred_element_type=jnp.float32)
    out = acc + bias_ref[...]                       # bias / ReLU stay in f32
    if apply_relu:
        out = jnp.maximum(out, 0.0)
    o_ref[...] = out.astype(o_ref.dtype)


def _pick_tiles(m, n):
    """Pick (tm, tn).  tn is a multiple of 128 (or exactly N), tm a multiple of
    8 (or exactly M); ragged edges are masked by Pallas (cdiv grid), so there is
    no host-side pad/slice.  We force >= 2 grid steps whenever the problem is
    big enough so the weight DMA of the next block overlaps MXU compute and
    both v7x TensorCores get work."""
    if n < 256:
        tn = n                                        # single full-N tile
    else:
        blocks = pl.cdiv(n, 128)
        tn = 128 * min(4, (blocks + 1) // 2)          # ~2 N tiles, <= 512 lanes
    gn = pl.cdiv(n, tn)
    if m <= 8:
        tm = m
    elif m <= 128:
        tm = _round_up(m, 8)
        if gn == 1 and m >= 16:
            tm = _round_up(pl.cdiv(m, 2), 8)          # guarantee >= 2 grid steps
    elif m <= 1024:
        tm = 128
    else:
        tm = 256
    return tm, tn


@functools.lru_cache(maxsize=None)
def _gemm_fn(m, k, n, relu, out_dtype_name):
    out_dtype = jnp.dtype(out_dtype_name)
    tm, tn = _pick_tiles(m, n)
    grid = (pl.cdiv(m, tm), pl.cdiv(n, tn))
    f = pl.pallas_call(
        functools.partial(_matmul_bias_kernel, apply_relu=relu),
        out_shape=jax.ShapeDtypeStruct((m, n), out_dtype),
        grid_spec=pltpu.PrefetchScalarGridSpec(
            num_scalar_prefetch=0,
            grid=grid,
            in_specs=[
                pl.BlockSpec((tm, k), lambda i, j: (i, 0)),   # single full-K block
                pl.BlockSpec((k, tn), lambda i, j: (0, j)),
                pl.BlockSpec((1, tn), lambda i, j: (0, j)),
            ],
            out_specs=pl.BlockSpec((tm, tn), lambda i, j: (i, j)),
        ),
        compiler_params=pltpu.CompilerParams(
            dimension_semantics=("parallel", "parallel"),
            vmem_limit_bytes=_VMEM_LIMIT),
    )
    return jax.jit(f)


def pallas_matmul_bias(a, b, bias, *, relu, out_dtype=_ACT_DTYPE):
    """maybe_relu(a @ b + bias) on the MXU.  a:(M,K), b:(K,N), bias:(N,)."""
    m, k = a.shape
    k2, n = b.shape
    assert k == k2, (k, k2)
    f = _gemm_fn(int(m), int(k), int(n), bool(relu), jnp.dtype(out_dtype).name)
    return f(a.astype(jnp.bfloat16), b.astype(jnp.bfloat16),
             bias.astype(jnp.float32).reshape(1, n))


# ----------------------------------------------------------------------------
# Pallas kernel 2: direct stride-1 kxk conv (+ folded BN bias, ReLU), NHWC.
# No im2col patches in HBM: one grid step per batch element; the pre-padded
# image is one VMEM block; the tap loop is statically unrolled, each tap is a
# full-width GEMM whose shifted slice accumulates into an f32 VMEM scratch.
# ----------------------------------------------------------------------------
def _conv_tap_kernel(x_ref, w_ref, b_ref, o_ref, acc_ref, *, kh, kw, oh, ow):
    hp, wp, c = x_ref.shape[1], x_ref.shape[2], x_ref.shape[3]
    cout = o_ref.shape[3]
    lhs = x_ref[0].reshape(hp * wp, c)              # wp % 8 == 0 -> free collapse
    acc_ref[...] = jnp.zeros_like(acc_ref)
    for t in range(kh * kw):                        # static unroll over taps
        r, s = divmod(t, kw)
        y = jnp.dot(lhs, w_ref[t], preferred_element_type=jnp.float32)
        y = y.reshape(hp, wp, cout)
        acc_ref[...] += y[r:r + oh, s:s + ow, :]
    out = jnp.maximum(acc_ref[...] + b_ref[...], 0.0)
    o_ref[...] = out[None].astype(o_ref.dtype)


@functools.lru_cache(maxsize=None)
def _conv_tap_fn(n, hp, wp, c, cout, kh, kw, oh, ow):
    f = pl.pallas_call(
        functools.partial(_conv_tap_kernel, kh=kh, kw=kw, oh=oh, ow=ow),
        out_shape=jax.ShapeDtypeStruct((n, oh, ow, cout), _ACT_DTYPE),
        grid_spec=pltpu.PrefetchScalarGridSpec(
            num_scalar_prefetch=0,
            grid=(n,),
            in_specs=[
                pl.BlockSpec((1, hp, wp, c), lambda b: (b, 0, 0, 0)),
                pl.BlockSpec((kh * kw, c, cout), lambda b: (0, 0, 0)),
                pl.BlockSpec((1, cout), lambda b: (0, 0)),
            ],
            out_specs=pl.BlockSpec((1, oh, ow, cout), lambda b: (b, 0, 0, 0)),
            scratch_shapes=[pltpu.VMEM((oh, ow, cout), jnp.float32)],
        ),
        compiler_params=pltpu.CompilerParams(
            dimension_semantics=("parallel",),
            vmem_limit_bytes=_VMEM_LIMIT),
    )
    return jax.jit(f)


def pallas_conv2d_direct(x, w_taps, bias, *, kh, kw, ph, pw, cout):
    n, h, w, c = x.shape
    oh = h + 2 * ph - kh + 1
    ow = w + 2 * pw - kw + 1
    hp = h + 2 * ph
    wp = _round_up(w + 2 * pw, 8)                   # sublane-align W (zero pad)
    x = x.astype(jnp.bfloat16)
    pad_w = (pw, wp - w - pw)
    if ph or pad_w[0] or pad_w[1]:
        x = jnp.pad(x, ((0, 0), (ph, ph), pad_w, (0, 0)))

    est = (3 * hp * wp * c * 2 + 2 * oh * ow * cout * 2 + kh * kw * c * cout * 2
           + oh * ow * cout * 4 + 2 * hp * wp * cout * 4)
    if est > _CONV_VMEM_BUDGET:
        # TODO(synk): tile over output rows instead of falling back for very
        # large images; at Inception-V3 sizes (<=299 input) this is never hit.
        taps = [x[:, r:r + oh, s:s + ow, :] for r in range(kh) for s in range(kw)]
        cols = jnp.concatenate(taps, axis=-1).reshape(n * oh * ow, kh * kw * c)
        out = pallas_matmul_bias(cols, w_taps.reshape(kh * kw * c, cout),
                                 bias, relu=True)
        return out.reshape(n, oh, ow, cout)

    f = _conv_tap_fn(int(n), int(hp), int(wp), int(c), int(cout),
                     int(kh), int(kw), int(oh), int(ow))
    return f(x, w_taps.astype(jnp.bfloat16), bias.astype(jnp.float32).reshape(1, cout))


# ----------------------------------------------------------------------------
# Pallas kernel 3: fused 2-layer head  relu(x@W1+b1) @ W2 + b2  (single launch)
# ----------------------------------------------------------------------------
def _head_kernel(x_ref, w1_ref, b1_ref, w2_ref, b2_ref, o_ref):
    h = jnp.dot(x_ref[...], w1_ref[...], preferred_element_type=jnp.float32)
    h = jnp.maximum(h + b1_ref[...], 0.0).astype(jnp.bfloat16)
    y = jnp.dot(h, w2_ref[...], preferred_element_type=jnp.float32)
    o_ref[...] = y + b2_ref[...]


@functools.lru_cache(maxsize=None)
def _head_fn(nb, din, dh, dout):
    f = pl.pallas_call(
        _head_kernel,
        out_shape=jax.ShapeDtypeStruct((nb, dout), jnp.float32),
        grid_spec=pltpu.PrefetchScalarGridSpec(
            num_scalar_prefetch=0,
            grid=(1,),
            in_specs=[
                pl.BlockSpec((nb, din), lambda i: (0, 0)),
                pl.BlockSpec((din, dh), lambda i: (0, 0)),
                pl.BlockSpec((1, dh), lambda i: (0, 0)),
                pl.BlockSpec((dh, dout), lambda i: (0, 0)),
                pl.BlockSpec((1, dout), lambda i: (0, 0)),
            ],
            out_specs=pl.BlockSpec((nb, dout), lambda i: (0, 0)),
        ),
        compiler_params=pltpu.CompilerParams(
            dimension_semantics=("arbitrary",),
            vmem_limit_bytes=_VMEM_LIMIT),
    )
    return jax.jit(f)


# ----------------------------------------------------------------------------
# Pooling glue (kept in lax, not the dominant compute)
# ----------------------------------------------------------------------------
def max_pool_3x3_s2(x):
    # TODO(synk): pooling kept in lax.reduce_window (no dedicated Pallas kernel).
    return lax.reduce_window(x, jnp.array(-jnp.inf, x.dtype), lax.max,
                             (1, 3, 3, 1), (1, 2, 2, 1), "VALID")


def avg_pool_3x3_s1_p1_sum(x):
    # Window SUM only (bf16); the 1/9 (count_include_pad=True) is folded into
    # the following 1x1 conv's weights -> no f32 round-trip on this branch.
    return lax.reduce_window(x, jnp.array(0, x.dtype), lax.add,
                             (1, 3, 3, 1), (1, 1, 1, 1),
                             ((0, 0), (1, 1), (1, 1), (0, 0)))


# ----------------------------------------------------------------------------
# Deterministic parameter construction + module builders
# ----------------------------------------------------------------------------
class _KeyGen:
    def __init__(self, seed):
        self._key = jax.random.PRNGKey(seed)

    def __call__(self):
        self._key, sub = jax.random.split(self._key)
        return sub


class BasicConv2d:
    """Conv2d(bias=False) + BatchNorm2d(eval, eps=1e-3) + ReLU; BN folded into
    the conv weights/bias.  `pre_scale` pre-multiplies the weights (used to
    fold the avg-pool 1/9 factor into the pooled-branch 1x1 conv)."""

    def __init__(self, kg, cin, cout, kernel, stride=1, padding=0, pre_scale=1.0):
        kh, kw = _pair(kernel)
        sh, sw = _pair(stride)
        ph, pw = _pair(padding)
        fan_in = cin * kh * kw
        w = jax.random.normal(kg(), (cout, cin, kh, kw), jnp.float32) * np.sqrt(2.0 / fan_in)
        gamma = jnp.ones((cout,), jnp.float32)
        beta = jnp.zeros((cout,), jnp.float32)
        run_mean = jnp.zeros((cout,), jnp.float32)
        run_var = jnp.ones((cout,), jnp.float32)
        scale = gamma / jnp.sqrt(run_var + _BN_EPS)            # BN (eval) fold
        w = w * (scale[:, None, None, None] * pre_scale)
        self.bias = (beta - run_mean * scale).astype(jnp.float32)
        self.cout = cout
        self.geom = (kh, kw, sh, sw, ph, pw)
        if (kh, kw) == (1, 1):
            assert (sh, sw, ph, pw) == (1, 1, 0, 0)
            self.mode = "1x1"
            self.wmat = w.reshape(cout, cin).T.astype(jnp.bfloat16)        # (C, Cout)
        elif (sh, sw) == (1, 1):
            self.mode = "direct"
            self.w_taps = jnp.transpose(w, (2, 3, 1, 0)).reshape(
                kh * kw, cin, cout).astype(jnp.bfloat16)                   # (T, C, Cout)
        else:
            self.mode = "im2col"                                           # stride-2 only
            self.wmat = jnp.transpose(w, (2, 3, 1, 0)).reshape(
                kh * kw * cin, cout).astype(jnp.bfloat16)                  # K = (r, s, c)

    def __call__(self, x):
        n, h, w_, c = x.shape
        kh, kw, sh, sw, ph, pw = self.geom
        if self.mode == "1x1":
            out = pallas_matmul_bias(x.reshape(n * h * w_, c), self.wmat,
                                     self.bias, relu=True)
            return out.reshape(n, h, w_, self.cout)
        if self.mode == "direct":
            return pallas_conv2d_direct(x, self.w_taps, self.bias,
                                        kh=kh, kw=kw, ph=ph, pw=pw, cout=self.cout)
        # stride-2 convs (few, small): explicit strided-slice columns + GEMM
        oh = (h + 2 * ph - kh) // sh + 1
        ow = (w_ + 2 * pw - kw) // sw + 1
        xp = jnp.pad(x, ((0, 0), (ph, ph), (pw, pw), (0, 0))) if (ph or pw) else x
        taps = [xp[:, r:r + sh * (oh - 1) + 1:sh, s:s + sw * (ow - 1) + 1:sw, :]
                for r in range(kh) for s in range(kw)]
        cols = jnp.concatenate(taps, axis=-1).reshape(n * oh * ow, kh * kw * c)
        out = pallas_matmul_bias(cols, self.wmat, self.bias, relu=True)
        return out.reshape(n, oh, ow, self.cout)


class Fused1x1:
    """Several 1x1-stride-1 BasicConv2d branches that read the SAME input,
    fused into one wide-N GEMM (weights concatenated along output channels)."""

    def __init__(self, convs):
        assert all(c.geom == (1, 1, 1, 1, 0, 0) for c in convs)
        self.wmat = jnp.concatenate([c.wmat for c in convs], axis=1)
        self.bias = jnp.concatenate([c.bias for c in convs], axis=0)
        self.splits = np.cumsum([c.cout for c in convs])[:-1].tolist()

    def __call__(self, x):
        n, h, w, c = x.shape
        out = pallas_matmul_bias(x.reshape(n * h * w, c), self.wmat, self.bias, relu=True)
        out = out.reshape(n, h, w, -1)
        return jnp.split(out, self.splits, axis=-1)


def make_inception_a(kg, cin, pool_features):
    b1 = BasicConv2d(kg, cin, 64, 1)
    b5_1 = BasicConv2d(kg, cin, 48, 1)
    b5_2 = BasicConv2d(kg, 48, 64, 5, padding=2)
    d1 = BasicConv2d(kg, cin, 64, 1)
    d2 = BasicConv2d(kg, 64, 96, 3, padding=1)
    d3 = BasicConv2d(kg, 96, 96, 3, padding=1)
    bp = BasicConv2d(kg, cin, pool_features, 1, pre_scale=1.0 / 9.0)
    fused = Fused1x1([b1, b5_1, d1])

    def apply(x):
        y1, y5, yd = fused(x)
        return jnp.concatenate(
            [y1, b5_2(y5), d3(d2(yd)), bp(avg_pool_3x3_s1_p1_sum(x))], axis=-1)

    return apply


def make_inception_b(kg, cin):
    b3 = BasicConv2d(kg, cin, 384, 3, stride=2)
    d1 = BasicConv2d(kg, cin, 64, 1)
    d2 = BasicConv2d(kg, 64, 96, 3, padding=1)
    d3 = BasicConv2d(kg, 96, 96, 3, stride=2)

    def apply(x):
        return jnp.concatenate([b3(x), d3(d2(d1(x))), max_pool_3x3_s2(x)], axis=-1)

    return apply


def make_inception_c(kg, cin, c7):
    b1 = BasicConv2d(kg, cin, 192, 1)
    s1 = BasicConv2d(kg, cin, c7, 1)
    s2 = BasicConv2d(kg, c7, c7, (1, 7), padding=(0, 3))
    s3 = BasicConv2d(kg, c7, 192, (7, 1), padding=(3, 0))
    d1 = BasicConv2d(kg, cin, c7, 1)
    d2 = BasicConv2d(kg, c7, c7, (7, 1), padding=(3, 0))
    d3 = BasicConv2d(kg, c7, c7, (1, 7), padding=(0, 3))
    d4 = BasicConv2d(kg, c7, c7, (7, 1), padding=(3, 0))
    d5 = BasicConv2d(kg, c7, 192, (1, 7), padding=(0, 3))
    bp = BasicConv2d(kg, cin, 192, 1, pre_scale=1.0 / 9.0)
    fused = Fused1x1([b1, s1, d1])

    def apply(x):
        y1, ys, yd = fused(x)
        return jnp.concatenate(
            [y1, s3(s2(ys)), d5(d4(d3(d2(yd)))), bp(avg_pool_3x3_s1_p1_sum(x))], axis=-1)

    return apply


def make_inception_d(kg, cin):
    a1 = BasicConv2d(kg, cin, 192, 1)
    a2 = BasicConv2d(kg, 192, 320, 3, stride=2)
    b1 = BasicConv2d(kg, cin, 192, 1)
    b2 = BasicConv2d(kg, 192, 192, (1, 7), padding=(0, 3))
    b3 = BasicConv2d(kg, 192, 192, (7, 1), padding=(3, 0))
    b4 = BasicConv2d(kg, 192, 192, 3, stride=2)
    fused = Fused1x1([a1, b1])

    def apply(x):
        ya, yb = fused(x)
        return jnp.concatenate(
            [a2(ya), b4(b3(b2(yb))), max_pool_3x3_s2(x)], axis=-1)

    return apply


def make_inception_e(kg, cin):
    b1 = BasicConv2d(kg, cin, 320, 1)
    a1 = BasicConv2d(kg, cin, 384, 1)
    a2a = BasicConv2d(kg, 384, 384, (1, 3), padding=(0, 1))
    a2b = BasicConv2d(kg, 384, 384, (3, 1), padding=(1, 0))
    d1 = BasicConv2d(kg, cin, 448, 1)
    d2 = BasicConv2d(kg, 448, 384, 3, padding=1)
    d3a = BasicConv2d(kg, 384, 384, (1, 3), padding=(0, 1))
    d3b = BasicConv2d(kg, 384, 384, (3, 1), padding=(1, 0))
    bp = BasicConv2d(kg, cin, 192, 1, pre_scale=1.0 / 9.0)
    fused = Fused1x1([b1, a1, d1])

    def apply(x):
        y1, ya, yd = fused(x)
        xd = d2(yd)
        return jnp.concatenate(
            [y1, a2a(ya), a2b(ya), d3a(xd), d3b(xd), bp(avg_pool_3x3_s1_p1_sum(x))],
            axis=-1)

    return apply


def make_inception_v3_features(kg):
    c1a = BasicConv2d(kg, 3, 32, 3, stride=2)
    c2a = BasicConv2d(kg, 32, 32, 3)
    c2b = BasicConv2d(kg, 32, 64, 3, padding=1)
    c3b = BasicConv2d(kg, 64, 80, 1)
    c4a = BasicConv2d(kg, 80, 192, 3)
    m5b = make_inception_a(kg, 192, 32)
    m5c = make_inception_a(kg, 256, 64)
    m5d = make_inception_a(kg, 288, 64)
    m6a = make_inception_b(kg, 288)
    m6b = make_inception_c(kg, 768, 128)
    m6c = make_inception_c(kg, 768, 160)
    m6d = make_inception_c(kg, 768, 160)
    m6e = make_inception_c(kg, 768, 192)
    m7a = make_inception_d(kg, 768)
    m7b = make_inception_e(kg, 1280)
    m7c = make_inception_e(kg, 2048)

    def apply(x_nchw):
        # One transpose to NHWC (channels-last) at the boundary.
        x = jnp.transpose(x_nchw, (0, 2, 3, 1)).astype(jnp.float32)
        # transform_input=True (torchvision default when pretrained weights requested)
        x0 = x[..., 0:1] * (0.229 / 0.5) + (0.485 - 0.5) / 0.5
        x1 = x[..., 1:2] * (0.224 / 0.5) + (0.456 - 0.5) / 0.5
        x2 = x[..., 2:3] * (0.225 / 0.5) + (0.406 - 0.5) / 0.5
        x = jnp.concatenate([x0, x1, x2], axis=-1).astype(_ACT_DTYPE)
        x = c1a(x); x = c2a(x); x = c2b(x)
        x = max_pool_3x3_s2(x)
        x = c3b(x); x = c4a(x)
        x = max_pool_3x3_s2(x)
        x = m5b(x); x = m5c(x); x = m5d(x)
        x = m6a(x)
        x = m6b(x); x = m6c(x); x = m6d(x); x = m6e(x)
        x = m7a(x)
        x = m7b(x); x = m7c(x)
        # AdaptiveAvgPool2d(1) + Dropout (eval: identity) + flatten + fc=Identity
        return jnp.mean(x.astype(jnp.float32), axis=(1, 2))   # (N, 2048) f32

    return apply


def make_inception_multiout(seed=0):
    kg = _KeyGen(seed)
    base = make_inception_v3_features(kg)
    # head: Dropout(0.5) -> Linear(2048,256) -> ReLU -> Dropout(0.3) -> Linear(256,6)
    # TODO(synk): Dropout layers are identity in eval-mode inference.
    w1 = jax.random.normal(kg(), (256, 2048), jnp.float32) * 0.02
    b1 = jnp.zeros((256,), jnp.float32)
    w2 = jax.random.normal(kg(), (6, 256), jnp.float32) * 0.02
    b2 = jnp.zeros((6,), jnp.float32)
    w1t = w1.T.astype(jnp.bfloat16)
    w2t = w2.T.astype(jnp.bfloat16)

    def apply(x):
        feat = base(x)                                        # (N, 2048) f32
        f = _head_fn(int(feat.shape[0]), 2048, 256, 6)
        return f(feat.astype(jnp.bfloat16), w1t, b1.reshape(1, 256),
                 w2t, b2.reshape(1, 6))                       # (N, 6) f32

    return apply


# ----------------------------------------------------------------------------
if __name__ == "__main__":
    model = make_inception_multiout(seed=0)
    # Inception-V3 geometry requires >= 75x75 spatial; keep batch small.
    x = jax.random.normal(jax.random.PRNGKey(0), (2, 3, 75, 75), jnp.float32)
    y = model(x)
    y = jax.block_until_ready(y)
    assert y.shape == (2, 6), y.shape
    assert bool(jnp.all(jnp.isfinite(y)))
    print("KERNEL_OK")
</pallas_src>

<mosaic_0001>
module attributes {stable_mosaic.version = 11 : i64} {
  func.func @_matmul_bias_kernel(%arg0: i32, %arg1: i32, %arg2: memref<256x27xbf16, #tpu.memory_space<vmem>>, %arg3: memref<27x32xbf16, #tpu.memory_space<vmem>>, %arg4: memref<1x32xf32, #tpu.memory_space<vmem>>, %arg5: memref<256x32xbf16, #tpu.memory_space<vmem>>) attributes {dimension_semantics = [#tpu.dimension_semantics<parallel>, #tpu.dimension_semantics<parallel>], iteration_bounds = array<i64: 11, 1>, scalar_prefetch = 0 : i64, scratch_operands = 0 : i64, tpu.core_type = #tpu.core_type<tc>, window_params = [{transform_indices = @transform_0, window_bounds = array<i64: 256, 27>}, {transform_indices = @transform_1, window_bounds = array<i64: 27, 32>}, {transform_indices = @transform_2, window_bounds = array<i64: 1, 32>}, {transform_indices = @transform_3, window_bounds = array<i64: 256, 32>}]} {
    %c0 = arith.constant 0 : index
    %c0_0 = arith.constant 0 : index
    %0 = vector.load %arg2[%c0, %c0_0] : memref<256x27xbf16, #tpu.memory_space<vmem>>, vector<256x27xbf16>
    %c0_1 = arith.constant 0 : index
    %c0_2 = arith.constant 0 : index
    %1 = vector.load %arg3[%c0_1, %c0_2] : memref<27x32xbf16, #tpu.memory_space<vmem>>, vector<27x32xbf16>
    %cst = arith.constant dense<0.000000e+00> : vector<256x32xf32>
    %2 = tpu.matmul %0, %1, %cst {dimension_numbers = #tpu.dot_dimension_numbers<[1], [0], [0], [1], [0, 0, 1, 1], [], []>} : vector<256x27xbf16>, vector<27x32xbf16>, vector<256x32xf32> -> vector<256x32xf32>
    %c0_3 = arith.constant 0 : index
    %c0_4 = arith.constant 0 : index
    %3 = vector.load %arg4[%c0_3, %c0_4] : memref<1x32xf32, #tpu.memory_space<vmem>>, vector<1x32xf32>
    %4 = vector.broadcast %3 : vector<1x32xf32> to vector<256x32xf32>
    %5 = arith.addf %2, %4 : vector<256x32xf32>
    %cst_5 = arith.constant 0.000000e+00 : f32
    %6 = vector.broadcast %cst_5 : f32 to vector<256x32xf32>
    %7 = arith.maximumf %5, %6 : vector<256x32xf32>
    %8 = arith.truncf %7 : vector<256x32xf32> to vector<256x32xbf16>
    %c0_6 = arith.constant 0 : index
    %c0_7 = arith.constant 0 : index
    %9 = vector.load %arg5[%c0_6, %c0_7] : memref<256x32xbf16, #tpu.memory_space<vmem>>, vector<256x32xbf16>
    tpu.vector_store %arg5[%c0_6, %c0_7], %8 {strides = array<i32>} : memref<256x32xbf16, #tpu.memory_space<vmem>>, vector<256x32xbf16>,
    return
  }
  func.func @transform_0(%arg0: i32, %arg1: i32) -> (i32, i32) {
    %c0_i32 = arith.constant 0 : i32
    %c0_i32_0 = arith.constant 0 : i32
    return %arg0, %c0_i32 : i32, i32
  }
  func.func @transform_1(%arg0: i32, %arg1: i32) -> (i32, i32) {
    %c0_i32 = arith.constant 0 : i32
    %c0_i32_0 = arith.constant 0 : i32
    return %c0_i32, %arg1 : i32, i32
  }
  func.func @transform_2(%arg0: i32, %arg1: i32) -> (i32, i32) {
    %c0_i32 = arith.constant 0 : i32
    %c0_i32_0 = arith.constant 0 : i32
    return %c0_i32, %arg1 : i32, i32
  }
  func.func @transform_3(%arg0: i32, %arg1: i32) -> (i32, i32) {
    %c0_i32 = arith.constant 0 : i32
    return %arg0, %arg1 : i32, i32
  }
}

</mosaic_0001>

<bundles_post_ra>
// kernel: tpu_custom_call.1
= control target key start
LH: loop header
LB: loop body
LE: loop exit
PB: predicated region body
PF: predicated region fallthrough
CT: control target
= control target key end

     0   :  { %s1362_s12 = smov 0   ;;  %s1364_s13 = smov 0   ;;  %s1707_s0 = inlined_call_operand.vmem [shape: bf16[2738,27], index: 0, kind: input, shape index: {}]   ;;  %s1708_s1 = inlined_call_operand.vmem [shape: bf16[27,32], index: 1, kind: input, shape index: {}]   ;;  %s1709_s2 = inlined_call_operand.vmem [shape: f32[1,32], index: 2, kind: input, shape index: {}]   ;;  %s1710_s3 = inlined_call_operand.vmem [shape: bf16[2738,32], index: 3, kind: output, shape index: {}]  }
   0x1   :  { %s1366_s14 = smov 0   ;;  %s1368_s15 = smov 0  }
   0x2   :  { %s1370_s16 = smov 0  }
   0x3 LB: > { %s989_s17 = sadd.s32 4294967295, %s1307_s16   ;;  %s25_s18 = sadd.s32 1, %s1303_s15  ;;  %s1307_s16 = sphi %s1370_s16, %s13_s16   ;;  %s1303_s15 = sphi %s1368_s15, %s1720_s15   ;;  %s1299_s14 = sphi %s1366_s14, %s1719_s14   ;;  %s1295_s13 = sphi %s1364_s13, %s1718_s13   ;;  %s1291_s12 = sphi %s1362_s12, %s1717_s12  }
   0x4   : > { %p27_p0 = scmp.ge.s32.totalorder %s25_s18, 11  ;;  %s112_s19 = sadd.s32 1, %s1295_s13 }
   0x5   : > { %p122_p1 = scmp.ne.s32.totalorder %s1295_s13, %s1291_s12  ;;  %p123_p2 = scmp.eq.s32.totalorder %s989_s17, 10 }
   0x6   : > { %s1722_s18 = smov (%p27_p0, %s25_s18), 0  ;;  %p995_p4 = scmp.ge.s32.totalorder %s1307_s16, 1 }
   0x7   : > { %p1394_p3 = por %p123_p2, %p122_p1  ;;  %s107_s21 = ssub.s32 %s1303_s15, %s1722_s18 }
   0x8   : > { %p177_p5 = scmp.lt.s32.totalorder %s1307_s16, 12  ;;  %p110_p6 = scmp.eq.s32.totalorder %s107_s21, 0 }
   0xa   : > { %p178_p7 = pnand %p995_p4, %p177_p5 }
   0xb   : > { %s1403_s22 = scalar_select %p110_p6, %s1295_s13, %s112_s19  }
   0xc   : > { %181 = sbr.rel (%p178_p7) target bundleno = 291 (0x123), region = 32  ;;  %s1412_s27 = sshll.u32 (!%p178_p7), %s1299_s14, 5 }
   0xd   : > { %p216_p8 = scmp.lt.s32.totalorder (!%p178_p7), %s1412_s27, 342  ;;  %s208_s10 = sand.u32 (!%p178_p7), 1, %s1291_s12  }
   0xe   : > { %s996_s11 = sshll.u32 (!%p178_p7), %s208_s10, 7 }
   0xf   : > { %s1464_s17 = scalar_lea.vmem (!%p178_p7), [#allocation2], %s996_s11  }
  0x11   : > { %v1069_v0 = vld [vmem:[%s1708_s1 + $0x8] sm:$0xf]  ;;  %v1121_v1 = vld [vmem:[%s1708_s1 + $0x8] sm:$0x30]  ;;  %vm418_vm0 = vcmask 1044480   ;;  %vm419_vm1 = vcmask 1045504  }
  0x12   : > { %v1070_v2 = vor.u32 %v1121_v1, %v1069_v0  ;;  %v1341_v3 = vmov 65535   ;;  %s217_s28 = scalar_select %p216_p8, %s1412_s27, 342  ;;  %v1120_v7 = vld [vmem:[%s1708_s1] sm:$0xff]  ;;  %vm369_vm2 = vcmask 220160   ;;  %vm578_vm3 = vcmask 257024  }
  0x13   : > { %v420_v4 = vsel %vm418_vm0, 4294967295, %v1341_v3  ;;  %v1459_v24 = vld [vmem:[%s1709_s2] ss:$0 sm:$0xff]  ;;  %s619_s12 = ssub.s32 (%p1394_p3), 343, %s1412_s27  ;;  %s1122_s19 = sshll.u32 (%p1394_p3), %s1299_s14, 7 }
  0x14   : > { %v421_v5 = vsel %vm419_vm1, %v420_v4, 0  ;;  %s998_s4 = sshll.u32 %s217_s28, 2  ;;  %p620_p9 = scmp.lt.s32.totalorder (%p1394_p3), %s619_s12, 32 }
  0x15   : > { %v423_v6 = vand.u32 %v1070_v2, %v421_v5  ;;  %s1422_s7 = scalar_lea.vmem %s1707_s0, %s998_s4  ;;  %s1567_s24 = scalar_lea.vmem (%p1394_p3), %s1710_s3, %s1122_s19  }
  0x16   : > { %v1104_v8 = vld [vmem:[%s1422_s7] sm:$0xff]  ;;  %v1105_v12 = vld [vmem:[%s1422_s7 + $0x8] sm:$0xff]  ;;  %v1106_v16 = vld [vmem:[%s1422_s7 + $0x10] sm:$0xff] }
  0x17   : > { %431 = vmatpush.bf16.msra.mxu0 %v423_v6  ;;  %1125 = vmatpush.bf16.msra.mxu1 %v423_v6  ;;  %v1108_v9 = vld [vmem:[%s1422_s7 + $0x20] sm:$0xff]  ;;  %v1109_v13 = vld [vmem:[%s1422_s7 + $0x28] sm:$0xff]  ;;  %v1110_v17 = vld [vmem:[%s1422_s7 + $0x30] sm:$0xff] }
  0x18   : > { %1126 = vmatpush.bf16.msra.mxu2 %v423_v6  ;;  %1127 = vmatpush.bf16.msra.mxu3 %v423_v6  ;;  %v1112_v10 = vld [vmem:[%s1422_s7 + $0x40] sm:$0xff]  ;;  %v1113_v14 = vld [vmem:[%s1422_s7 + $0x48] sm:$0xff]  ;;  %v1114_v18 = vld [vmem:[%s1422_s7 + $0x50] sm:$0xff] }
  0x19   : > { %v1116_v11 = vld [vmem:[%s1422_s7 + $0x60] sm:$0xff]  ;;  %v1117_v15 = vld [vmem:[%s1422_s7 + $0x68] sm:$0xff]  ;;  %v1118_v19 = vld [vmem:[%s1422_s7 + $0x70] sm:$0xff] }
  0x1a   : > { %v1107_v20 = vld [vmem:[%s1422_s7 + $0x18] sm:$0xff] }
  0x1b   : > { %432 = vmatpush.bf16.msra.mxu0 %v1120_v7  ;;  %1128 = vmatpush.bf16.msra.mxu1 %v1120_v7  ;;  %v1111_v21 = vld [vmem:[%s1422_s7 + $0x38] sm:$0xff] }
  0x1c   : > { %1129 = vmatpush.bf16.msra.mxu2 %v1120_v7  ;;  %1130 = vmatpush.bf16.msra.mxu3 %v1120_v7  ;;  %v1115_v22 = vld [vmem:[%s1422_s7 + $0x58] sm:$0xff] }
  0x1d   : > { %v1119_v23 = vld [vmem:[%s1422_s7 + $0x78] sm:$0xff] }
  0x1e   : > { %1071 = vmatmul.msk.bf16.vlgmr.msra.gmra.mxu0 %vm369_vm2, %v1104_v8  ;;  %1075 = vmatmul.msk.bf16.vlgmr.msra.gmra.mxu1 %vm369_vm2, %v1108_v9 }
  0x1f   : > { %1079 = vmatmul.msk.bf16.vlgmr.msra.gmra.mxu2 %vm369_vm2, %v1112_v10  ;;  %1083 = vmatmul.msk.bf16.vlgmr.msra.gmra.mxu3 %vm369_vm2, %v1116_v11 }
  0x2e   : > { %1072 = vmatmul.msk.bf16.gmra.mxu0 %vm369_vm2, %v1105_v12  ;;  %1076 = vmatmul.msk.bf16.gmra.mxu1 %vm369_vm2, %v1109_v13 }
  0x2f   : > { %1080 = vmatmul.msk.bf16.gmra.mxu2 %vm369_vm2, %v1113_v14  ;;  %1084 = vmatmul.msk.bf16.gmra.mxu3 %vm369_vm2, %v1117_v15 }
  0x3e   : > { %1073 = vmatmul.msk.bf16.gmra.mxu0 %vm369_vm2, %v1106_v16  ;;  %1077 = vmatmul.msk.bf16.gmra.mxu1 %vm369_vm2, %v1110_v17 }
  0x3f   : > { %1081 = vmatmul.msk.bf16.gmra.mxu2 %vm369_vm2, %v1114_v18  ;;  %1085 = vmatmul.msk.bf16.gmra.mxu3 %vm369_vm2, %v1118_v19 }
  0x4e   : > { %1074 = vmatmul.msk.bf16.gmra.mxu0 %vm369_vm2, %v1107_v20  ;;  %1078 = vmatmul.msk.bf16.gmra.mxu1 %vm369_vm2, %v1111_v21 }
  0x4f   : > { %1082 = vmatmul.msk.bf16.gmra.mxu2 %vm369_vm2, %v1115_v22  ;;  %1086 = vmatmul.msk.bf16.gmra.mxu3 %vm369_vm2, %v1119_v23 }
  0x9b   : > { %v434_v25 = vpop.f32.mrf.mxu0  ;;  %v454_v26 = vpop.f32.mrf.mxu1 }
  0x9c   : > { %v435_v27 = vadd.f32 %v1459_v24, %v434_v25  ;;  %v455_v28 = vadd.f32 %v1459_v24, %v454_v26 }
  0x9e   : > { %v514_v29 = vmax.f32 %v435_v27, 0.0  ;;  %v522_v30 = vmax.f32 %v455_v28, 0.0 }
  0xa0   : > { %v546_v31 = vpack.c.bf16 %v514_v29, %v514_v29  ;;  %v554_v32 = vpack.c.bf16 %v522_v30, %v522_v30 }
  0xa2   : > { %579 = vst.msk [vmem:[%s1464_s17] sm:$0xf] %vm578_vm3, %v546_v31  ;;  %v474_v33 = vpop.f32.mrf.mxu2  ;;  %v494_v34 = vpop.f32.mrf.mxu3 }
  0xa3   : > { %587 = vst.msk [vmem:[%s1464_s17 + $0x20] sm:$0xf] %vm578_vm3, %v554_v32  ;;  %v475_v35 = vadd.f32 %v1459_v24, %v474_v33  ;;  %v495_v36 = vadd.f32 %v1459_v24, %v494_v34  ;;  %v436_v37 = vpop.f32.mrf.mxu0  ;;  %v456_v38 = vpop.f32.mrf.mxu1 }
  0xa4   : > { %v437_v39 = vadd.f32 %v1459_v24, %v436_v37  ;;  %v457_v40 = vadd.f32 %v1459_v24, %v456_v38 }
  0xa5   : > { %v530_v41 = vmax.f32 %v475_v35, 0.0  ;;  %v538_v42 = vmax.f32 %v495_v36, 0.0 }
  0xa6   : > { %v515_v43 = vmax.f32 %v437_v39, 0.0  ;;  %v523_v44 = vmax.f32 %v457_v40, 0.0 }
  0xa7   : > { %v562_v45 = vpack.c.bf16 %v530_v41, %v530_v41  ;;  %v570_v46 = vpack.c.bf16 %v538_v42, %v538_v42 }
  0xa8   : > { %v547_v47 = vpack.c.bf16 %v515_v43, %v515_v43  ;;  %v555_v48 = vpack.c.bf16 %v523_v44, %v523_v44 }
  0xa9   : > { %595 = vst.msk [vmem:[%s1464_s17 + $0x40] sm:$0xf] %vm578_vm3, %v562_v45 }
  0xaa   : > { %603 = vst.msk [vmem:[%s1464_s17 + $0x60] sm:$0xf] %vm578_vm3, %v570_v46  ;;  %v476_v49 = vpop.f32.mrf.mxu2  ;;  %v496_v50 = vpop.f32.mrf.mxu3 }
  0xab   : > { %580 = vst.msk [vmem:[%s1464_s17 + $0x4] sm:$0xf] %vm578_vm3, %v547_v47  ;;  %v477_v51 = vadd.f32 %v1459_v24, %v476_v49  ;;  %v497_v52 = vadd.f32 %v1459_v24, %v496_v50  ;;  %v439_v53 = vpop.f32.mrf.mxu0  ;;  %v459_v54 = vpop.f32.mrf.mxu1 }
  0xac   : > { %588 = vst.msk [vmem:[%s1464_s17 + $0x24] sm:$0xf] %vm578_vm3, %v555_v48  ;;  %v440_v55 = vadd.f32 %v1459_v24, %v439_v53  ;;  %v460_v56 = vadd.f32 %v1459_v24, %v459_v54 }
  0xad   : > { %v531_v57 = vmax.f32 %v477_v51, 0.0  ;;  %v539_v58 = vmax.f32 %v497_v52, 0.0 }
  0xae   : > { %v516_v59 = vmax.f32 %v440_v55, 0.0  ;;  %v524_v60 = vmax.f32 %v460_v56, 0.0 }
  0xaf   : > { %v563_v61 = vpack.c.bf16 %v531_v57, %v531_v57  ;;  %v571_v62 = vpack.c.bf16 %v539_v58, %v539_v58 }
  0xb0   : > { %v548_v63 = vpack.c.bf16 %v516_v59, %v516_v59  ;;  %v556_v0 = vpack.c.bf16 %v524_v60, %v524_v60 }
  0xb1   : > { %596 = vst.msk [vmem:[%s1464_s17 + $0x44] sm:$0xf] %vm578_vm3, %v563_v61 }
  0xb2   : > { %604 = vst.msk [vmem:[%s1464_s17 + $0x64] sm:$0xf] %vm578_vm3, %v571_v62  ;;  %v479_v1 = vpop.f32.mrf.mxu2  ;;  %v499_v2 = vpop.f32.mrf.mxu3 }
  0xb3   : > { %581 = vst.msk [vmem:[%s1464_s17 + $0x8] sm:$0xf] %vm578_vm3, %v548_v63  ;;  %v480_v3 = vadd.f32 %v1459_v24, %v479_v1  ;;  %v500_v4 = vadd.f32 %v1459_v24, %v499_v2  ;;  %v441_v5 = vpop.f32.mrf.mxu0  ;;  %v461_v6 = vpop.f32.mrf.mxu1 }
  0xb4   : > { %589 = vst.msk [vmem:[%s1464_s17 + $0x28] sm:$0xf] %vm578_vm3, %v556_v0  ;;  %v442_v7 = vadd.f32 %v1459_v24, %v441_v5  ;;  %v462_v8 = vadd.f32 %v1459_v24, %v461_v6 }
  0xb5   : > { %v532_v9 = vmax.f32 %v480_v3, 0.0  ;;  %v540_v10 = vmax.f32 %v500_v4, 0.0 }
  0xb6   : > { %v517_v11 = vmax.f32 %v442_v7, 0.0  ;;  %v525_v12 = vmax.f32 %v462_v8, 0.0 }
  0xb7   : > { %v564_v13 = vpack.c.bf16 %v532_v9, %v532_v9  ;;  %v572_v14 = vpack.c.bf16 %v540_v10, %v540_v10 }
  0xb8   : > { %v549_v15 = vpack.c.bf16 %v517_v11, %v517_v11  ;;  %v557_v16 = vpack.c.bf16 %v525_v12, %v525_v12 }
  0xb9   : > { %597 = vst.msk [vmem:[%s1464_s17 + $0x48] sm:$0xf] %vm578_vm3, %v564_v13 }
  0xba   : > { %605 = vst.msk [vmem:[%s1464_s17 + $0x68] sm:$0xf] %vm578_vm3, %v572_v14  ;;  %v481_v17 = vpop.f32.mrf.mxu2  ;;  %v501_v18 = vpop.f32.mrf.mxu3 }
  0xbb   : > { %582 = vst.msk [vmem:[%s1464_s17 + $0xc] sm:$0xf] %vm578_vm3, %v549_v15  ;;  %v482_v19 = vadd.f32 %v1459_v24, %v481_v17  ;;  %v502_v20 = vadd.f32 %v1459_v24, %v501_v18  ;;  %v444_v21 = vpop.f32.mrf.mxu0  ;;  %v464_v22 = vpop.f32.mrf.mxu1 }
  0xbc   : > { %590 = vst.msk [vmem:[%s1464_s17 + $0x2c] sm:$0xf] %vm578_vm3, %v557_v16  ;;  %v445_v23 = vadd.f32 %v1459_v24, %v444_v21  ;;  %v465_v25 = vadd.f32 %v1459_v24, %v464_v22 }
  0xbd   : > { %v533_v26 = vmax.f32 %v482_v19, 0.0  ;;  %v541_v27 = vmax.f32 %v502_v20, 0.0 }
  0xbe   : > { %v518_v28 = vmax.f32 %v445_v23, 0.0  ;;  %v526_v29 = vmax.f32 %v465_v25, 0.0 }
  0xbf   : > { %v565_v30 = vpack.c.bf16 %v533_v26, %v533_v26  ;;  %v573_v31 = vpack.c.bf16 %v541_v27, %v541_v27 }
  0xc0   : > { %v550_v32 = vpack.c.bf16 %v518_v28, %v518_v28  ;;  %v558_v33 = vpack.c.bf16 %v526_v29, %v526_v29 }
  0xc1   : > { %598 = vst.msk [vmem:[%s1464_s17 + $0x4c] sm:$0xf] %vm578_vm3, %v565_v30 }
  0xc2   : > { %606 = vst.msk [vmem:[%s1464_s17 + $0x6c] sm:$0xf] %vm578_vm3, %v573_v31  ;;  %v484_v34 = vpop.f32.mrf.mxu2  ;;  %v504_v35 = vpop.f32.mrf.mxu3 }
  0xc3   : > { %583 = vst.msk [vmem:[%s1464_s17 + $0x10] sm:$0xf] %vm578_vm3, %v550_v32  ;;  %v485_v36 = vadd.f32 %v1459_v24, %v484_v34  ;;  %v505_v37 = vadd.f32 %v1459_v24, %v504_v35  ;;  %v446_v38 = vpop.f32.mrf.mxu0  ;;  %v466_v39 = vpop.f32.mrf.mxu1 }
  0xc4   : > { %591 = vst.msk [vmem:[%s1464_s17 + $0x30] sm:$0xf] %vm578_vm3, %v558_v33  ;;  %v447_v40 = vadd.f32 %v1459_v24, %v446_v38  ;;  %v467_v41 = vadd.f32 %v1459_v24, %v466_v39 }
  0xc5   : > { %v534_v42 = vmax.f32 %v485_v36, 0.0  ;;  %v542_v43 = vmax.f32 %v505_v37, 0.0 }
  0xc6   : > { %v519_v44 = vmax.f32 %v447_v40, 0.0  ;;  %v527_v45 = vmax.f32 %v467_v41, 0.0 }
  0xc7   : > { %v566_v46 = vpack.c.bf16 %v534_v42, %v534_v42  ;;  %v574_v47 = vpack.c.bf16 %v542_v43, %v542_v43 }
  0xc8   : > { %v551_v48 = vpack.c.bf16 %v519_v44, %v519_v44  ;;  %v559_v49 = vpack.c.bf16 %v527_v45, %v527_v45 }
  0xc9   : > { %599 = vst.msk [vmem:[%s1464_s17 + $0x50] sm:$0xf] %vm578_vm3, %v566_v46 }
  0xca   : > { %607 = vst.msk [vmem:[%s1464_s17 + $0x70] sm:$0xf] %vm578_vm3, %v574_v47  ;;  %v486_v50 = vpop.f32.mrf.mxu2  ;;  %v506_v51 = vpop.f32.mrf.mxu3 }
  0xcb   : > { %584 = vst.msk [vmem:[%s1464_s17 + $0x14] sm:$0xf] %vm578_vm3, %v551_v48  ;;  %v487_v52 = vadd.f32 %v1459_v24, %v486_v50  ;;  %v507_v53 = vadd.f32 %v1459_v24, %v506_v51  ;;  %v449_v54 = vpop.f32.mrf.mxu0  ;;  %v469_v55 = vpop.f32.mrf.mxu1 }
  0xcc   : > { %592 = vst.msk [vmem:[%s1464_s17 + $0x34] sm:$0xf] %vm578_vm3, %v559_v49  ;;  %v450_v56 = vadd.f32 %v1459_v24, %v449_v54  ;;  %v470_v57 = vadd.f32 %v1459_v24, %v469_v55 }
  0xcd   : > { %v535_v58 = vmax.f32 %v487_v52, 0.0  ;;  %v543_v59 = vmax.f32 %v507_v53, 0.0 }
  0xce   : > { %v520_v60 = vmax.f32 %v450_v56, 0.0  ;;  %v528_v61 = vmax.f32 %v470_v57, 0.0 }
  0xcf   : > { %v567_v62 = vpack.c.bf16 %v535_v58, %v535_v58  ;;  %v575_v63 = vpack.c.bf16 %v543_v59, %v543_v59 }
  0xd0   : > { %v552_v0 = vpack.c.bf16 %v520_v60, %v520_v60  ;;  %v560_v1 = vpack.c.bf16 %v528_v61, %v528_v61 }
  0xd1   : > { %600 = vst.msk [vmem:[%s1464_s17 + $0x54] sm:$0xf] %vm578_vm3, %v567_v62 }
  0xd2   : > { %608 = vst.msk [vmem:[%s1464_s17 + $0x74] sm:$0xf] %vm578_vm3, %v575_v63  ;;  %v489_v2 = vpop.f32.mrf.mxu2  ;;  %v509_v3 = vpop.f32.mrf.mxu3 }
  0xd3   : > { %585 = vst.msk [vmem:[%s1464_s17 + $0x18] sm:$0xf] %vm578_vm3, %v552_v0  ;;  %v490_v4 = vadd.f32 %v1459_v24, %v489_v2  ;;  %v510_v5 = vadd.f32 %v1459_v24, %v509_v3  ;;  %v451_v6 = vpop.f32.mrf.mxu0  ;;  %v471_v7 = vpop.f32.mrf.mxu1 }
  0xd4   : > { %593 = vst.msk [vmem:[%s1464_s17 + $0x38] sm:$0xf] %vm578_vm3, %v560_v1  ;;  %v452_v8 = vadd.f32 %v1459_v24, %v451_v6  ;;  %v472_v9 = vadd.f32 %v1459_v24, %v471_v7 }
  0xd5   : > { %v536_v10 = vmax.f32 %v490_v4, 0.0  ;;  %v544_v11 = vmax.f32 %v510_v5, 0.0 }
  0xd6   : > { %v521_v12 = vmax.f32 %v452_v8, 0.0  ;;  %v529_v13 = vmax.f32 %v472_v9, 0.0 }
  0xd7   : > { %v568_v14 = vpack.c.bf16 %v536_v10, %v536_v10  ;;  %v576_v15 = vpack.c.bf16 %v544_v11, %v544_v11 }
  0xd8   : > { %v553_v16 = vpack.c.bf16 %v521_v12, %v521_v12  ;;  %v561_v17 = vpack.c.bf16 %v529_v13, %v529_v13 }
  0xd9   : > { %601 = vst.msk [vmem:[%s1464_s17 + $0x58] sm:$0xf] %vm578_vm3, %v568_v14 }
  0xda   : > { %609 = vst.msk [vmem:[%s1464_s17 + $0x78] sm:$0xf] %vm578_vm3, %v576_v15  ;;  %v491_v18 = vpop.f32.mrf.mxu2  ;;  %v511_v19 = vpop.f32.mrf.mxu3 }
  0xdb   : > { %586 = vst.msk [vmem:[%s1464_s17 + $0x1c] sm:$0xf] %vm578_vm3, %v553_v16  ;;  %v492_v20 = vadd.f32 %v1459_v24, %v491_v18  ;;  %v512_v21 = vadd.f32 %v1459_v24, %v511_v19 }
  0xdc   : > { %594 = vst.msk [vmem:[%s1464_s17 + $0x3c] sm:$0xf] %vm578_vm3, %v561_v17 }
  0xdd   : > { %v537_v22 = vmax.f32 %v492_v20, 0.0  ;;  %v545_v23 = vmax.f32 %v512_v21, 0.0 }
  0xde   : > { %617 = sbr.rel (!%p1394_p3) target bundleno = 291 (0x123), region = 36 }
  0xdf   : > { %v569_v25 = vpack.c.bf16 %v537_v22, %v537_v22  ;;  %v577_v26 = vpack.c.bf16 %v545_v23, %v545_v23 }
  0xe1   : > { %602 = vst.msk [vmem:[%s1464_s17 + $0x5c] sm:$0xf] %vm578_vm3, %v569_v25 }
  0xe2   : > { %610 = vst.msk [vmem:[%s1464_s17 + $0x7c] sm:$0xf] %vm578_vm3, %v577_v26 }
  0xe3   : > { %s1724_s12 = smov (!%p620_p9, %s619_s12), 32 }
  0xe4   : > { %s1089_s25 = sshll.u32 %s1724_s12, 2 }
  0xe5   : > { %p1092_p10 = scmp.eq.s32.totalorder %s1089_s25, 0 }
  0xe6   : > { %s1573_s26 = sshrl.u32 (!%p1092_p10), %s1724_s12, 5 }
  0xe7   : > { %629 = sbr.rel (%p1092_p10) target bundleno = 291 (0x123), region = 40  ;;  %p1093_p11 = scmp.le.s32.totalorder (!%p1092_p10), %s1573_s26, 0 }
  0xec   : > { %919 = sbr.rel (%p1093_p11) target bundleno = 274 (0x112), region = 118  ;;  %s1712_s14 = smov (!%p1093_p11), %s1567_s24 }
  0xed   : > { %s1713_s20 = smov (!%p1093_p11), %s1464_s17  ;;  %s1582_s27 = smov (!%p1093_p11), 0  }
  0xee   : > { %s1584_s28 = smov (!%p1093_p11), 0  }
  0xf1 LB: >> { %v646_v24 = vld [vmem:[%s1315_s20] sm:$0xf]  ;;  %v648_v27 = vld [vmem:[%s1315_s20 + $0x4] sm:$0xf]  ;;  %v650_v28 = vld [vmem:[%s1315_s20 + $0x8] sm:$0xf]  ;;  %s1323_s28 = sphi %s1584_s28, %s640_s28   ;;  %s1319_s27 = sphi %s1582_s27, %s1716_s27   ;;  %s1315_s20 = sphi %s1713_s20, %s1715_s20   ;;  %s1311_s14 = sphi %s1712_s14, %s1714_s14  }
  0xf2   : >> { %647 = vst [vmem:[%s1311_s14] sm:$0xf] %v646_v24  ;;  %v652_v29 = vld [vmem:[%s1315_s20 + $0xc] sm:$0xf]  ;;  %v654_v30 = vld [vmem:[%s1315_s20 + $0x10] sm:$0xf]  ;;  %s710_s29 = sadd.s32 1, %s1319_s27 }
  0xf3   : >> { %649 = vst [vmem:[%s1311_s14 + $0x4] sm:$0xf] %v648_v27  ;;  %v656_v31 = vld [vmem:[%s1315_s20 + $0x14] sm:$0xf]  ;;  %v658_v32 = vld [vmem:[%s1315_s20 + $0x18] sm:$0xf]  ;;  %p711_p12 = scmp.ge.s32.totalorder %s710_s29, %s1573_s26 }
  0xf4   : >> { %651 = vst [vmem:[%s1311_s14 + $0x8] sm:$0xf] %v650_v28  ;;  %v660_v33 = vld [vmem:[%s1315_s20 + $0x1c] sm:$0xf]  ;;  %v662_v34 = vld [vmem:[%s1315_s20 + $0x20] sm:$0xf] }
  0xf5   : >> { %653 = vst [vmem:[%s1311_s14 + $0xc] sm:$0xf] %v652_v29  ;;  %v664_v35 = vld [vmem:[%s1315_s20 + $0x24] sm:$0xf]  ;;  %v666_v36 = vld [vmem:[%s1315_s20 + $0x28] sm:$0xf] }
  0xf6   : >> { %655 = vst [vmem:[%s1311_s14 + $0x10] sm:$0xf] %v654_v30  ;;  %v668_v37 = vld [vmem:[%s1315_s20 + $0x2c] sm:$0xf]  ;;  %v670_v38 = vld [vmem:[%s1315_s20 + $0x30] sm:$0xf] }
  0xf7   : >> { %657 = vst [vmem:[%s1311_s14 + $0x14] sm:$0xf] %v656_v31  ;;  %v672_v39 = vld [vmem:[%s1315_s20 + $0x34] sm:$0xf]  ;;  %v674_v40 = vld [vmem:[%s1315_s20 + $0x38] sm:$0xf] }
  0xf8   : >> { %659 = vst [vmem:[%s1311_s14 + $0x18] sm:$0xf] %v658_v32  ;;  %v676_v41 = vld [vmem:[%s1315_s20 + $0x3c] sm:$0xf]  ;;  %v678_v42 = vld [vmem:[%s1315_s20 + $0x40] sm:$0xf] }
  0xf9   : >> { %661 = vst [vmem:[%s1311_s14 + $0x1c] sm:$0xf] %v660_v33  ;;  %v680_v43 = vld [vmem:[%s1315_s20 + $0x44] sm:$0xf]  ;;  %s1726_s29 = smov (%p711_p12, %s710_s29), 0  ;;  %s640_s28 = sadd.s32 1, %s1323_s28  }
  0xfa   : >> { %663 = vst [vmem:[%s1311_s14 + $0x20] sm:$0xf] %v662_v34  ;;  %v682_v44 = vld [vmem:[%s1315_s20 + $0x48] sm:$0xf]  ;;  %v684_v45 = vld [vmem:[%s1315_s20 + $0x4c] sm:$0xf]  ;;  %p639_p13 = scmp.ge.s32.totalorder %s640_s28, %s1573_s26  ;;  %s1716_s27 = smov %s1726_s29 }
  0xfb   : >> { %665 = vst [vmem:[%s1311_s14 + $0x24] sm:$0xf] %v664_v35  ;;  %s1094_s30 = sshll.u32 %s1726_s29, 7  ;;  %v686_v46 = vld [vmem:[%s1315_s20 + $0x50] sm:$0xf] }
  0xfc   : >> { %667 = vst [vmem:[%s1311_s14 + $0x28] sm:$0xf] %v666_v36  ;;  %s1643_s4 = scalar_lea.vmem %s1464_s17, %s1094_s30 [#allocation2]   ;;  %s716_s5 = scalar_lea.vmem %s1567_s24, %s1094_s30   ;;  %v688_v47 = vld [vmem:[%s1315_s20 + $0x54] sm:$0xf]  ;;  %v690_v48 = vld [vmem:[%s1315_s20 + $0x58] sm:$0xf] }
  0xfd   : >> { %669 = vst [vmem:[%s1311_s14 + $0x2c] sm:$0xf] %v668_v37  ;;  %v692_v49 = vld [vmem:[%s1315_s20 + $0x5c] sm:$0xf]  ;;  %v694_v50 = vld [vmem:[%s1315_s20 + $0x60] sm:$0xf] }
  0xfe   : >> { %671 = vst [vmem:[%s1311_s14 + $0x30] sm:$0xf] %v670_v38  ;;  %v696_v51 = vld [vmem:[%s1315_s20 + $0x64] sm:$0xf]  ;;  %v698_v52 = vld [vmem:[%s1315_s20 + $0x68] sm:$0xf] }
  0xff   : >> { %673 = vst [vmem:[%s1311_s14 + $0x34] sm:$0xf] %v672_v39  ;;  %v700_v53 = vld [vmem:[%s1315_s20 + $0x6c] sm:$0xf]  ;;  %v702_v54 = vld [vmem:[%s1315_s20 + $0x70] sm:$0xf] }
 0x100   : >> { %675 = vst [vmem:[%s1311_s14 + $0x38] sm:$0xf] %v674_v40  ;;  %v704_v55 = vld [vmem:[%s1315_s20 + $0x74] sm:$0xf]  ;;  %v706_v56 = vld [vmem:[%s1315_s20 + $0x78] sm:$0xf] }
 0x101   : >> { %677 = vst [vmem:[%s1311_s14 + $0x3c] sm:$0xf] %v676_v41  ;;  %v708_v57 = vld [vmem:[%s1315_s20 + $0x7c] sm:$0xf]  ;;  %s1715_s20 = smov %s1643_s4 }
 0x102   : >> { %679 = vst [vmem:[%s1311_s14 + $0x40] sm:$0xf] %v678_v42 }
 0x103   : >> { %681 = vst [vmem:[%s1311_s14 + $0x44] sm:$0xf] %v680_v43 }
 0x104   : >> { %683 = vst [vmem:[%s1311_s14 + $0x48] sm:$0xf] %v682_v44 }
 0x105   : >> { %685 = vst [vmem:[%s1311_s14 + $0x4c] sm:$0xf] %v684_v45 }
 0x106   : >> { %687 = vst [vmem:[%s1311_s14 + $0x50] sm:$0xf] %v686_v46 }
 0x107   : >> { %689 = vst [vmem:[%s1311_s14 + $0x54] sm:$0xf] %v688_v47 }
 0x108   : >> { %691 = vst [vmem:[%s1311_s14 + $0x58] sm:$0xf] %v690_v48 }
 0x109   : >> { %693 = vst [vmem:[%s1311_s14 + $0x5c] sm:$0xf] %v692_v49 }
 0x10a   : >> { %695 = vst [vmem:[%s1311_s14 + $0x60] sm:$0xf] %v694_v50 }
 0x10b   : >> { %697 = vst [vmem:[%s1311_s14 + $0x64] sm:$0xf] %v696_v51 }
 0x10c   : >> { %699 = vst [vmem:[%s1311_s14 + $0x68] sm:$0xf] %v698_v52 }
 0x10d   : >> { %701 = vst [vmem:[%s1311_s14 + $0x6c] sm:$0xf] %v700_v53  ;;  %642 = sbr.rel (!%p639_p13) target bundleno = 241 (0xf1), region = 124 }
 0x10e   : >> { %703 = vst [vmem:[%s1311_s14 + $0x70] sm:$0xf] %v702_v54 }
 0x10f   : >> { %705 = vst [vmem:[%s1311_s14 + $0x74] sm:$0xf] %v704_v55 }
 0x110   : >> { %707 = vst [vmem:[%s1311_s14 + $0x78] sm:$0xf] %v706_v56 }
 0x111   : >> { %709 = vst [vmem:[%s1311_s14 + $0x7c] sm:$0xf] %v708_v57  ;;  %s1714_s14 = smov %s716_s5 }
 0x112 PF: > { %s1684_s6 = sand.u32 31, %s1724_s12   ;;  %s1123_s7 = sshll.u32 %s1573_s26, 7 }
 0x113   : > { %s721_s8 = scalar_lea.vmem %s1464_s17, %s1123_s7 [#allocation2]   ;;  %s723_s9 = scalar_lea.vmem %s1567_s24, %s1123_s7  }
 0x114   : > { %p1099_p0 = scmp.le.s32.totalorder %s1684_s6, 0 }
 0x115   : > { %s1325_s10 = smov (!%p1099_p0), %s723_s9   ;;  %s1329_s11 = smov (!%p1099_p0), %s721_s8  }
 0x116   : > { %933 = sbr.rel (%p1099_p0) target bundleno = 291 (0x123), region = 129  ;;  %s1333_s19 = smov (!%p1099_p0), 0  }
 0x117   : > { %s1337_s21 = smov (!%p1099_p0), 0  }
 0x11b LB: >> { %v733_v58 = vld [vmem:[%s1331_s11] sm:$0xf]  ;;  %s735_s12 = sadd.s32 1, %s1335_s19  ;;  %s727_s21 = sadd.s32 1, %s1339_s21   ;;  %s1339_s21 = sphi %s1337_s21, %s727_s21   ;;  %s1335_s19 = sphi %s1333_s19, %s1334_s19   ;;  %s1331_s11 = sphi %s1329_s11, %s740_s11   ;;  %s1327_s10 = sphi %s1325_s10, %s741_s10  }
 0x11c   : >> { %734 = vst [vmem:[%s1327_s10] sm:$0xf] %v733_v58  ;;  %p736_p1 = scmp.ge.s32.totalorder %s735_s12, %s1684_s6  ;;  %p726_p2 = scmp.ge.s32.totalorder %s727_s21, %s1684_s6 }
 0x11e   : >> { %s1728_s12 = smov (%p736_p1, %s735_s12), 0  ;;  %729 = sbr.rel (!%p726_p2) target bundleno = 283 (0x11b), region = 135 }
 0x11f   : >> { %s1100_s17 = sshll.u32 %s1728_s12, 2  ;;  %s1334_s19 = smov %s1728_s12  }
 0x120   : >> { %s740_s11 = scalar_lea.vmem %s721_s8, %s1100_s17 [#allocation2]   ;;  %s741_s10 = scalar_lea.vmem %s723_s9, %s1100_s17  }
 0x123 PF: > { %s13_s16 = sadd.s32 1, %s1307_s16   ;;  %s1717_s12 = smov %s1295_s13 }
 0x124   : > { %p10_p3 = scmp.ge.s32.totalorder %s13_s16, 13   ;;  %s1718_s13 = smov %s1403_s22 }
 0x125   : > { %s1719_s14 = smov %s1303_s15  ;;  %s1720_s15 = smov %s1722_s18 }
 0x126   :  { %12 = sbr.rel (!%p10_p3) target bundleno = 3 (0x3), region = 146 }

</bundles_post_ra>
